<compile_context>
chip_gen: v6e
topology: v6e:2x2x1
jax: 0.10.0
libtpu: 0.0.40
codegen_flags: <defaults>
</compile_context>

<pallas_src>
import functools

import jax
import jax.numpy as jnp
from jax import lax
from jax.experimental import pallas as pl
from jax.experimental.pallas import tpu as pltpu


def _self_attn_kernel(xq_ref, x_ref, m_ref, bv_ref, gamma_ref,
                      out_ref, attn_ref, *, C):
    x = x_ref[0]                                   # (C, N)  f32 : keys/values side
    x_q = xq_ref[0]                                # (C, TQ) f32 : query tile + residual

    # One fused MXU matmul:
    #   rows [0, C)        -> t  = (Wq^T Wk) x
    #   row  C             -> cb = (bq^T Wk) x     (column bias of the energy)
    #   rows [C+8, 2C+8)   -> v  = Wv x            (bv added at the end)
    proj = jnp.dot(m_ref[...], x.astype(jnp.bfloat16),
                   preferred_element_type=jnp.float32)            # (2C+8, N)
    t = proj[:C]                                   # (C, N)
    cb = proj[C:C + 1]                             # (1, N)
    v = proj[C + 8:]                               # (C, N)

    # energy[i, j] = x_q[:, i]^T (Wq^T Wk) x[:, j] + (bq^T Wk) x[:, j]
    energy = lax.dot_general(x_q.astype(jnp.bfloat16), t.astype(jnp.bfloat16),
                             (((0,), (0,)), ((), ())),
                             preferred_element_type=jnp.float32) + cb   # (TQ, N)

    # Row softmax in f32 (VPU/EUP); divide goes to the EUP.
    m_row = jnp.max(energy, axis=-1, keepdims=True)
    p = jnp.exp(energy - m_row)
    inv = pl.reciprocal(jnp.sum(p, axis=-1, keepdims=True), approx=True)
    attn = p * inv                                                       # (TQ, N)
    attn_ref[0] = attn

    # out[c, i] = sum_j v[c, j] * attn[i, j]   (+ bv, since attention rows sum to 1)
    out = lax.dot_general(v.astype(jnp.bfloat16), attn.astype(jnp.bfloat16),
                          (((1,), (1,)), ((), ())),
                          preferred_element_type=jnp.float32)            # (C, TQ)

    gamma = gamma_ref[0, 0]
    out_ref[0] = gamma * (out + bv_ref[...]) + x_q


def _pick_query_tile(n):
    if n >= 1024 and n % 256 == 0:
        return 256
    if n % 128 == 0:
        return 128
    return n  # single query tile fallback (block == full dim is always legal)


def self_attn_pallas(x, params):
    """x: (B, C, W, H) float32. Returns (out (B,C,W,H), attention (B,N,N))."""
    B, C, W, H = x.shape
    N = W * H
    tq = _pick_query_tile(N)
    nq = N // tq

    x_flat = x.reshape(B, C, N).astype(jnp.float32)

    wq, wk, wv = params["wq"], params["wk"], params["wv"]
    bq, bv = params["bq"], params["bv"]

    # Fused / restructured projection weight (precomputed once in f32, cast to bf16).
    a_mat = wq.T @ wk                                  # (C, C):  Wq^T Wk
    c_row = bq.T @ wk                                  # (1, C):  bq^T Wk
    pad = jnp.zeros((7, C), jnp.float32)               # keep the Wv rows sublane-aligned
    m_fused = jnp.concatenate([a_mat, c_row, pad, wv], axis=0).astype(jnp.bfloat16)

    kernel = pl.pallas_call(
        functools.partial(_self_attn_kernel, C=C),
        out_shape=(
            jax.ShapeDtypeStruct((B, C, N), jnp.float32),
            jax.ShapeDtypeStruct((B, N, N), jnp.float32),
        ),
        grid_spec=pltpu.PrefetchScalarGridSpec(
            num_scalar_prefetch=0,
            grid=(B, nq),
            in_specs=[
                pl.BlockSpec((1, C, tq), lambda b, q: (b, 0, q)),      # x query tile
                pl.BlockSpec((1, C, N), lambda b, q: (b, 0, 0)),       # x full (K/V side)
                pl.BlockSpec((2 * C + 8, C), lambda b, q: (0, 0)),     # fused weight (bf16)
                pl.BlockSpec((C, 1), lambda b, q: (0, 0)),             # value bias
                pl.BlockSpec(memory_space=pltpu.MemorySpace.SMEM),     # gamma (1,1)
            ],
            out_specs=[
                pl.BlockSpec((1, C, tq), lambda b, q: (b, 0, q)),      # out tile
                pl.BlockSpec((1, tq, N), lambda b, q: (b, q, 0)),      # attention row block
            ],
        ),
        compiler_params=pltpu.CompilerParams(
            dimension_semantics=("parallel", "parallel"),
            vmem_limit_bytes=32 * 1024 * 1024,
        ),
    )

    out_flat, attn = kernel(x_flat, x_flat, m_fused,
                            bv.astype(jnp.float32), params["gamma"])
    return out_flat.reshape(B, C, W, H), attn


def init_params(key, in_dim):
    """Deterministic init mirroring nn.Conv2d defaults (uniform +/- 1/sqrt(fan_in))
    and gamma = 0, as in Self_Attn.__init__."""
    c8 = in_dim // 8
    bound = 1.0 / jnp.sqrt(jnp.float32(in_dim))
    ks = jax.random.split(key, 6)
    u = lambda k, shape: jax.random.uniform(k, shape, jnp.float32, -bound, bound)
    return {
        "wq": u(ks[0], (c8, in_dim)),
        "bq": u(ks[1], (c8, 1)),
        "wk": u(ks[2], (c8, in_dim)),
        "bk": u(ks[3], (c8, 1)),
        "wv": u(ks[4], (in_dim, in_dim)),
        "bv": u(ks[5], (in_dim, 1)),
        "gamma": jnp.zeros((1, 1), jnp.float32),   # nn.Parameter(torch.zeros(1))
    }


def self_attn_reference(x, params):
    """Pure-JAX reference matching the PyTorch forward exactly (f32)."""
    B, C, W, H = x.shape
    N = W * H
    xf = x.reshape(B, C, N)
    q = jnp.einsum("oc,bcn->bon", params["wq"], xf) + params["bq"][None]   # (B,C8,N)
    k = jnp.einsum("oc,bcn->bon", params["wk"], xf) + params["bk"][None]
    v = jnp.einsum("oc,bcn->bon", params["wv"], xf) + params["bv"][None]
    energy = jnp.einsum("bci,bcj->bij", q, k)                              # (B,N,N)
    attn = jax.nn.softmax(energy, axis=-1)
    out = jnp.einsum("bcj,bij->bci", v, attn)                              # (B,C,N)
    out = params["gamma"][0, 0] * out + xf
    return out.reshape(B, C, W, H), attn


if __name__ == "__main__":
    key = jax.random.PRNGKey(0)
    k_x, k_p = jax.random.split(key)

    B, C, W, H = 2, 32, 16, 16          # in_dim=32 -> query/key channels = 4, N = 256
    x = jax.random.normal(k_x, (B, C, W, H), jnp.float32)
    params = init_params(k_p, C)
    # gamma is initialised to 0 (like the module); use a nonzero value here so the
    # attention-weighted output path is actually exercised by the check.
    params["gamma"] = jnp.full((1, 1), 0.5, jnp.float32)

    out, attn = self_attn_pallas(x, params)
    out = jax.block_until_ready(out)
    attn = jax.block_until_ready(attn)

    out_ref, attn_ref = self_attn_reference(x, params)
    assert out.shape == (B, C, W, H) and attn.shape == (B, W * H, W * H)
    # bf16 MXU operands + approximate reciprocal -> compare with bf16-level tolerance.
    ok_out = jnp.allclose(out, out_ref, atol=3e-2, rtol=3e-2)
    ok_attn = jnp.allclose(attn, attn_ref, atol=5e-3, rtol=5e-2)
    if not (ok_out and ok_attn):
        err_o = float(jnp.max(jnp.abs(out - out_ref)))
        err_a = float(jnp.max(jnp.abs(attn - attn_ref)))
        raise AssertionError(f"Pallas kernel mismatch: out max|err|={err_o}, attn max|err|={err_a}")

    print("KERNEL_OK")
</pallas_src>

<mosaic_0001>
module attributes {stable_mosaic.version = 11 : i64} {
  func.func @_self_attn_kernel(%arg0: i32, %arg1: i32, %arg2: memref<1x32x128xf32, #tpu.memory_space<vmem>>, %arg3: memref<1x32x256xf32, #tpu.memory_space<vmem>>, %arg4: memref<72x32xbf16, #tpu.memory_space<vmem>>, %arg5: memref<32x1xf32, #tpu.memory_space<vmem>>, %arg6: memref<1x1xf32, #tpu.memory_space<smem>>, %arg7: memref<1x32x128xf32, #tpu.memory_space<vmem>>, %arg8: memref<1x128x256xf32, #tpu.memory_space<vmem>>) attributes {dimension_semantics = [#tpu.dimension_semantics<parallel>, #tpu.dimension_semantics<parallel>], iteration_bounds = array<i64: 2, 2>, scalar_prefetch = 0 : i64, scratch_operands = 0 : i64, tpu.core_type = #tpu.core_type<tc>, window_params = [{transform_indices = @transform_0, window_bounds = array<i64: 1, 32, 128>}, {transform_indices = @transform_1, window_bounds = array<i64: 1, 32, 256>}, {pipeline_mode = #tpu.pipeline_mode<synchronous>, transform_indices = @transform_2, window_bounds = array<i64: 72, 32>}, {pipeline_mode = #tpu.pipeline_mode<synchronous>, transform_indices = @transform_3, window_bounds = array<i64: 32, 1>}, {transform_indices = @transform_4, window_bounds = array<i64: 1, 1>}, {transform_indices = @transform_5, window_bounds = array<i64: 1, 32, 128>}, {transform_indices = @transform_6, window_bounds = array<i64: 1, 128, 256>}]} {
    %c0 = arith.constant 0 : index
    %c0_0 = arith.constant 0 : index
    %c0_1 = arith.constant 0 : index
    %0 = vector.load %arg3[%c0, %c0_0, %c0_1] : memref<1x32x256xf32, #tpu.memory_space<vmem>>, vector<1x32x256xf32>
    %1 = vector.shape_cast %0 : vector<1x32x256xf32> to vector<32x256xf32>
    %c0_2 = arith.constant 0 : index
    %c0_3 = arith.constant 0 : index
    %c0_4 = arith.constant 0 : index
    %2 = vector.load %arg2[%c0_2, %c0_3, %c0_4] : memref<1x32x128xf32, #tpu.memory_space<vmem>>, vector<1x32x128xf32>
    %3 = vector.shape_cast %2 : vector<1x32x128xf32> to vector<32x128xf32>
    %c0_5 = arith.constant 0 : index
    %c0_6 = arith.constant 0 : index
    %4 = vector.load %arg4[%c0_5, %c0_6] : memref<72x32xbf16, #tpu.memory_space<vmem>>, vector<72x32xbf16>
    %5 = arith.truncf %1 : vector<32x256xf32> to vector<32x256xbf16>
    %cst = arith.constant dense<0.000000e+00> : vector<72x256xf32>
    %6 = tpu.matmul %4, %5, %cst {dimension_numbers = #tpu.dot_dimension_numbers<[1], [0], [0], [1], [0, 0, 1, 1], [], []>} : vector<72x32xbf16>, vector<32x256xbf16>, vector<72x256xf32> -> vector<72x256xf32>
    %7 = vector.extract_strided_slice %6 {offsets = [0, 0], sizes = [32, 256], strides = [1, 1]} : vector<72x256xf32> to vector<32x256xf32>
    %8 = vector.extract_strided_slice %6 {offsets = [32, 0], sizes = [1, 256], strides = [1, 1]} : vector<72x256xf32> to vector<1x256xf32>
    %9 = vector.extract_strided_slice %6 {offsets = [40, 0], sizes = [32, 256], strides = [1, 1]} : vector<72x256xf32> to vector<32x256xf32>
    %10 = arith.truncf %3 : vector<32x128xf32> to vector<32x128xbf16>
    %11 = arith.truncf %7 : vector<32x256xf32> to vector<32x256xbf16>
    %cst_7 = arith.constant dense<0.000000e+00> : vector<128x256xf32>
    %12 = tpu.matmul %10, %11, %cst_7 {dimension_numbers = #tpu.dot_dimension_numbers<[0], [0], [1], [1], [0, 1, 1, 1], [], []>} : vector<32x128xbf16>, vector<32x256xbf16>, vector<128x256xf32> -> vector<128x256xf32>
    %13 = vector.broadcast %8 : vector<1x256xf32> to vector<128x256xf32>
    %14 = arith.addf %12, %13 : vector<128x256xf32>
    %cst_8 = arith.constant dense<0xFF800000> : vector<128xf32>
    %15 = vector.multi_reduction <maximumf>, %14, %cst_8 [1] : vector<128x256xf32> to vector<128xf32>
    %16 = vector.shape_cast %15 : vector<128xf32> to vector<128x1xf32>
    %17 = vector.broadcast %16 : vector<128x1xf32> to vector<128x256xf32>
    %18 = arith.subf %14, %17 : vector<128x256xf32>
    %19 = math.exp %18 : vector<128x256xf32>
    %cst_9 = arith.constant dense<0.000000e+00> : vector<128xf32>
    %20 = vector.multi_reduction <add>, %19, %cst_9 [1] : vector<128x256xf32> to vector<128xf32>
    %21 = vector.shape_cast %20 : vector<128xf32> to vector<128x1xf32>
    %22 = tpu.reciprocal %21 {approx = true} : vector<128x1xf32> -> vector<128x1xf32>
    %23 = vector.broadcast %22 : vector<128x1xf32> to vector<128x256xf32>
    %24 = arith.mulf %19, %23 : vector<128x256xf32>
    %c0_10 = arith.constant 0 : index
    %c0_11 = arith.constant 0 : index
    %c0_12 = arith.constant 0 : index
    %25 = vector.load %arg8[%c0_10, %c0_11, %c0_12] : memref<1x128x256xf32, #tpu.memory_space<vmem>>, vector<1x128x256xf32>
    %26 = vector.shape_cast %25 : vector<1x128x256xf32> to vector<128x256xf32>
    %27 = vector.shape_cast %24 : vector<128x256xf32> to vector<1x128x256xf32>
    tpu.vector_store %arg8[%c0_10, %c0_11, %c0_12], %27 {strides = array<i32>} : memref<1x128x256xf32, #tpu.memory_space<vmem>>, vector<1x128x256xf32>,
    %28 = arith.truncf %9 : vector<32x256xf32> to vector<32x256xbf16>
    %29 = arith.truncf %24 : vector<128x256xf32> to vector<128x256xbf16>
    %cst_13 = arith.constant dense<0.000000e+00> : vector<32x128xf32>
    %30 = tpu.matmul %28, %29, %cst_13 {dimension_numbers = #tpu.dot_dimension_numbers<[1], [1], [0], [0], [0, 0, 1, 0], [], []>} : vector<32x256xbf16>, vector<128x256xbf16>, vector<32x128xf32> -> vector<32x128xf32>
    %c0_14 = arith.constant 0 : index
    %c0_15 = arith.constant 0 : index
    %31 = memref.load %arg6[%c0_14, %c0_15] : memref<1x1xf32, #tpu.memory_space<smem>>
    %c0_16 = arith.constant 0 : index
    %c0_17 = arith.constant 0 : index
    %32 = vector.load %arg5[%c0_16, %c0_17] : memref<32x1xf32, #tpu.memory_space<vmem>>, vector<32x1xf32>
    %33 = vector.broadcast %32 : vector<32x1xf32> to vector<32x128xf32>
    %34 = arith.addf %30, %33 : vector<32x128xf32>
    %35 = vector.broadcast %31 : f32 to vector<32x128xf32>
    %36 = arith.mulf %35, %34 : vector<32x128xf32>
    %37 = arith.addf %36, %3 : vector<32x128xf32>
    %c0_18 = arith.constant 0 : index
    %c0_19 = arith.constant 0 : index
    %c0_20 = arith.constant 0 : index
    %38 = vector.load %arg7[%c0_18, %c0_19, %c0_20] : memref<1x32x128xf32, #tpu.memory_space<vmem>>, vector<1x32x128xf32>
    %39 = vector.shape_cast %38 : vector<1x32x128xf32> to vector<32x128xf32>
    %40 = vector.shape_cast %37 : vector<32x128xf32> to vector<1x32x128xf32>
    tpu.vector_store %arg7[%c0_18, %c0_19, %c0_20], %40 {strides = array<i32>} : memref<1x32x128xf32, #tpu.memory_space<vmem>>, vector<1x32x128xf32>,
    return
  }
  func.func @transform_0(%arg0: i32, %arg1: i32) -> (i32, i32, i32) {
    %c0_i32 = arith.constant 0 : i32
    %c0_i32_0 = arith.constant 0 : i32
    return %arg0, %c0_i32, %arg1 : i32, i32, i32
  }
  func.func @transform_1(%arg0: i32, %arg1: i32) -> (i32, i32, i32) {
    %c0_i32 = arith.constant 0 : i32
    %c0_i32_0 = arith.constant 0 : i32
    %c0_i32_1 = arith.constant 0 : i32
    return %arg0, %c0_i32, %c0_i32_0 : i32, i32, i32
  }
  func.func @transform_2(%arg0: i32, %arg1: i32) -> (i32, i32) {
    %c0_i32 = arith.constant 0 : i32
    %c0_i32_0 = arith.constant 0 : i32
    %c0_i32_1 = arith.constant 0 : i32
    return %c0_i32, %c0_i32_0 : i32, i32
  }
  func.func @transform_3(%arg0: i32, %arg1: i32) -> (i32, i32) {
    %c0_i32 = arith.constant 0 : i32
    %c0_i32_0 = arith.constant 0 : i32
    %c0_i32_1 = arith.constant 0 : i32
    return %c0_i32, %c0_i32_0 : i32, i32
  }
  func.func @transform_4(%arg0: i32, %arg1: i32) -> (i32, i32) {
    %c0_i32 = arith.constant 0 : i32
    %c0_i32_0 = arith.constant 0 : i32
    %c0_i32_1 = arith.constant 0 : i32
    return %c0_i32, %c0_i32_0 : i32, i32
  }
  func.func @transform_5(%arg0: i32, %arg1: i32) -> (i32, i32, i32) {
    %c0_i32 = arith.constant 0 : i32
    %c0_i32_0 = arith.constant 0 : i32
    return %arg0, %c0_i32, %arg1 : i32, i32, i32
  }
  func.func @transform_6(%arg0: i32, %arg1: i32) -> (i32, i32, i32) {
    %c0_i32 = arith.constant 0 : i32
    %c0_i32_0 = arith.constant 0 : i32
    return %arg0, %arg1, %c0_i32 : i32, i32, i32
  }
}

</mosaic_0001>

<bundles_post_ra>
// kernel: tpu_custom_call.1
= control target key start
LH: loop header
LB: loop body
LE: loop exit
PB: predicated region body
PF: predicated region fallthrough
CT: control target
= control target key end

     0   :  { %s2456_s0 = inlined_call_operand.hbm [shape: f32[2,32,256], index: 0, kind: input, shape index: {}]   ;;  %s2457_s1 = inlined_call_operand.hbm [shape: f32[2,32,256], index: 1, kind: input, shape index: {}]   ;;  %s2458_s2 = inlined_call_operand.vmem [shape: bf16[72,32], index: 2, kind: input, shape index: {}]   ;;  %s2459_s3 = inlined_call_operand.vmem [shape: f32[32,1], index: 3, kind: input, shape index: {}]   ;;  %s2460_s4 = inlined_call_operand.<no memory space> [shape: f32[1,1], index: 4, kind: input, shape index: {}]   ;;  %s2461_s5 = inlined_call_operand.hbm [shape: f32[2,32,256], index: 5, kind: output, shape index: {0}]   ;;  %s2462_s6 = inlined_call_operand.hbm [shape: f32[2,256,256], index: 6, kind: output, shape index: {1}]  }
   0x1   :  { %2476 = sst [smem:[#allocation19_spill]] %s2456_s0 }
   0x2   :  { %2477 = sst [smem:[#allocation20_spill]] %s2461_s5 }
   0x3   :  { %2478 = sst [smem:[#allocation21_spill]] %s2462_s6 }
   0x4   :  { %12 = sst [smem:[#allocation2]] %s2460_s4 }
   0x5   :  { %13 = vsyncpa [#allocation4], 0 }
   0x6   :  { %15 = vsyncpa [#allocation4 + $0x1], 0 }
   0x7   :  { %16 = vsyncpa [#allocation7], 0 }
   0x8   :  { %18 = vsyncpa [#allocation7 + $0x1], 0 }
   0x9   :  { %19 = vsyncpa [#allocation5], 0 }
   0xa   :  { %21 = vsyncpa [#allocation5 + $0x1], 0 }
   0xb   :  { %22 = vsyncpa [#allocation10], 0 }
   0xc   :  { %24 = vsyncpa [#allocation10 + $0x1], 0  ;;  %s1771_s23 = smov 0   ;;  %s1773_s24 = smov 0  }
   0xd   :  { %s1775_s25 = smov 0   ;;  %s1777_s26 = smov 0  }
   0xe   :  { %s1779_s27 = smov 0   ;;  %s1781_s28 = smov 0  }
   0xf   :  { %s1783_s4 = smov 0   ;;  %s1785_s29 = smov 0  }
  0x10   :  { %s1787_s30 = smov 0   ;;  %s1789_s7 = smov 0  }
  0x11   :  { %s1791_s8 = smov 0  }
  0x12 LB: > { %s2463_s9 = sadd.s32 4294967295, %s1718_s8   ;;  %s1220_s10 = sadd.s32 4294967294, %s1718_s8   ;;  %s1718_s8 = sphi %s1791_s8, %s30_s8   ;;  %s1714_s7 = sphi %s1789_s7, %s2514_s7   ;;  %s1710_s30 = sphi %s1787_s30, %s2513_s30   ;;  %s1706_s29 = sphi %s1785_s29, %s2512_s29   ;;  %s1702_s4 = sphi %s1783_s4, %s2511_s4   ;;  %s1698_s28 = sphi %s1781_s28, %s2510_s28   ;;  %s1694_s27 = sphi %s1779_s27, %s2509_s27   ;;  %s1690_s26 = sphi %s1777_s26, %s2508_s26   ;;  %s1686_s25 = sphi %s1775_s25, %s2507_s25   ;;  %s1682_s24 = sphi %s1773_s24, %s2506_s24   ;;  %s1678_s23 = sphi %s1771_s23, %s2505_s23  }
  0x13   : > { %s39_s11 = sadd.s32 1, %s1710_s30  ;;  %s42_s12 = sadd.s32 1, %s1714_s7 }
  0x14   : > { %p40_p0 = scmp.ge.s32.totalorder %s39_s11, 2  ;;  %s51_s13 = sadd.s32 1, %s1698_s28 }
  0x15   : > { %p58_p1 = scmp.ne.s32.totalorder %s1698_s28, %s1694_s27  ;;  %p2471_p2 = scmp.eq.s32.totalorder %s1718_s8, 0 }
  0x16   : > { %s2516_s11 = smov (%p40_p0, %s39_s11), 0  ;;  %s2518_s12 = smov (!%p40_p0, %s42_s12), %s1714_s7 }
  0x17   : > { %2479 = sst [smem:[#allocation15_spill]] %s2516_s11  ;;  %s47_s14 = ssub.s32 %s1710_s30, %s2516_s11 }
  0x18   : > { %p1841_p3 = por %p2471_p2, %p58_p1  ;;  %p44_p4 = scmp.ge.s32.totalorder %s2518_s12, 2 }
  0x19   : > { %p2472_p5 = scmp.ne.s32.totalorder %s1694_s27, %s1690_s26  ;;  %p179_p6 = scmp.eq.s32.totalorder %s2463_s9, 3 }
  0x1a   : > { %p185_p7 = scmp.eq.s32.totalorder %s1220_s10, 3  ;;  %s2520_s12 = smov (%p44_p4, %s2518_s12), 0 }
  0x1b   : > { %2481 = sst [smem:[#allocation16_spill]] %s2520_s12  ;;  %p1851_p8 = por %p179_p6, %p58_p1 }
  0x1c   : > { %p1858_p9 = por %p185_p7, %p2472_p5  ;;  %s1864_s18 = ssub.s32 %s1714_s7, %s2520_s12 }
  0x1d   : > { %s2482_s16 = scalar_select %p1851_p8, 1, 0 }
  0x1e   : > { %s2484_s17 = scalar_select %p1858_p9, 1, 0 }
  0x1f   : > { %2483 = sst [smem:[#allocation17_spill]] %s2482_s16  ;;  %s48_s19 = sor.u32 %s47_s14, %s1864_s18 }
  0x20   : > { %2485 = sst [smem:[#allocation18_spill]] %s2484_s17  ;;  %p75_p10 = scmp.eq.s32.totalorder %s1864_s18, 0 }
  0x21   : > { %p49_p11 = scmp.eq.s32.totalorder %s48_s19, 0  ;;  %p1302_p12 = scmp.lt.s32.totalorder %s1718_s8, 4 }
  0x22   : > { %s242_s20 = sand.u32 1, %s1698_s28   ;;  %s1224_s21 = sshll.u32 %s1714_s7, 3 }
  0x23   : > { %s1872_s22 = scalar_select %p49_p11, %s1698_s28, %s51_s13  }
  0x24   : > { %s1223_s10 = sshll.u32 %s242_s20, 5  ;;  %s251_s9 = sadd.s32 %s1710_s30, %s1224_s21 }
  0x25   : > { %s1225_s11 = sshll.u32 %s251_s9, 7  ;;  %s246_s5 = scalar_lea.vmem [#allocation3], %s1223_s10 }
  0x26   : > { %s254_s17 = sshll.u32 %s246_s5, 4  ;;  %s2486_s0 = sld [smem:[#allocation19_spill]]  ;;  %s255_s17 = int_to_ptr.vmem [resolvable:$true] %s254_s17 }
  0x27   : > { %p1882_p13 = pnand %p1302_p12, %p1841_p3  ;;  %p1229_p0 = scmp.ge.s32.totalorder %s1718_s8, 1 }
  0x28   : > { %s243_s13 = scalar_lea.sflag [#allocation4], %s242_s20  ;;  %s1521_s19 = scalar_lea.vmem %s255_s17, 512 }
  0x29   : > { %p1510_p1 = pneg %p1882_p13  ;;  %p1522_p4 = scmp.ne.s32.totalorder %s255_s17, %s1521_s19 }
  0x2a   : > { %s1720_s5 = smov [#allocation3]  }
  0x2b   : > { %p1524_p6 = pnand %p1522_p4, %p1510_p1  ;;  %s1526_s9 = sshll.u32 %s1720_s5, 4  ;;  %s1527_s9 = int_to_ptr.vmem [resolvable:$false] %s1526_s9 }
  0x2c   : > { %s253_s12 = scalar_lea.hbm %s2486_s0, %s1225_s11  ;;  %s1528_s6 = scalar_lea.vmem %s1527_s9, 1024 }
  0x2d   : > { %p1525_p7 = pneg %p1524_p6  ;;  %p1529_p11 = scmp.lt.s32.totalorder %s255_s17, %s1527_s9 }
  0x2e   : > { %p1530_p2 = scmp.lt.s32.totalorder %s1528_s6, %s1521_s19 }
  0x30   : > { %p1531_p5 = por %p1530_p2, %p1529_p11 }
  0x32   : > { %p1532_p3 = pnand %p1531_p5, %p1525_p7 }
  0x34   : > { %1535 = shalt.err (!%p1532_p3)
}
  0x35   : > { %s2473_s11 = smov 256   ;;  %s1722_s15 = smov 128  }
  0x36   : > { %s1723_s16 = smov 8   ;;  %p283_p2 = scmp.lt.s32.totalorder %s1718_s8, 5 }
  0x37   : > { %1291 = dma.hbm_to_vmem [thread:$0]  (!%p1882_p13), %s253_s12, 512, %s255_s17, %s243_s13, %s2473_s11, %s1722_s15, %s1723_s16  }
  0x38   : > { %p1895_p5 = pnand %p1229_p0, %p283_p2  ;;  %s2489_s21 = sadd.s32 4294967295, %s1718_s8  }
  0x39   : > { %p65_p1 = scmp.eq.s32.totalorder %s2489_s21, 0  ;;  %s77_s10 = sadd.s32 1, %s1686_s25 }
  0x3a   : > { %s1905_s19 = scalar_select %p75_p10, %s1686_s25, %s77_s10  }
  0x3b   : > { %p2490_p4 = scmp.ne.s32.totalorder %s1694_s27, %s1690_s26  ;;  %p84_p7 = scmp.ne.s32.totalorder %s1686_s25, %s1682_s24 }
  0x3c   : > { %p90_p13 = scmp.ne.s32.totalorder %s1682_s24, %s1678_s23  ;;  %s264_s12 = sand.u32 1, %s1686_s25  }
  0x3d   : > { %p1910_p6 = por %p65_p1, %p2490_p4  ;;  %p2492_p11 = scmp.eq.s32.totalorder %s1718_s8, 0 }
  0x3e   : > { %p1921_p3 = por %p90_p13, %p65_p1  ;;  %s1226_s14 = sshll.u32 %s264_s12, 6 }
  0x3f   : > { %p86_p0 = por %p84_p7, %p2492_p11  ;;  %s1262_s13 = sshll.u32 %s1714_s7, 10 }
  0x40   : > { %s274_s6 = scalar_lea.hbm %s2457_s1, %s1262_s13  ;;  %s268_s15 = scalar_lea.vmem [#allocation6], %s1226_s14 }
  0x41   : > { %s275_s16 = sshll.u32 %s268_s15, 4  ;;  %p1931_p10 = pnand %p1302_p12, %p86_p0  ;;  %s276_s16 = int_to_ptr.vmem [resolvable:$true] %s275_s16 }
  0x42   : > { %s265_s23 = scalar_lea.sflag [#allocation7], %s264_s12  ;;  %s1549_s10 = scalar_lea.vmem %s276_s16, 1024 }
  0x43   : > { %p1538_p2 = pneg %p1931_p10  ;;  %p1550_p1 = scmp.ne.s32.totalorder %s276_s16, %s1549_s10 }
  0x44   : > { %s1724_s11 = smov [#allocation6]  }
  0x45   : > { %p1552_p4 = pnand %p1550_p1, %p1538_p2  ;;  %s1554_s0 = sshll.u32 %s1724_s11, 4  ;;  %s1555_s0 = int_to_ptr.vmem [resolvable:$false] %s1554_s0 }
  0x46   : > { %s1556_s13 = scalar_lea.vmem %s1555_s0, 2048  ;;  %p1557_p13 = scmp.lt.s32.totalorder %s276_s16, %s1555_s0 }
  0x47   : > { %p1553_p7 = pneg %p1552_p4  ;;  %p1558_p11 = scmp.lt.s32.totalorder %s1556_s13, %s1549_s10 }
  0x49   : > { %p1559_p9 = por %p1558_p11, %p1557_p13 }
  0x4b   : > { %p1560_p8 = pnand %p1559_p9, %p1553_p7 }
  0x4d   : > { %1563 = shalt.err (!%p1560_p8)
}
  0x4e   : > { %s1725_s14 = smov 16   ;;  %s2495_s9 = smov 256  }
  0x4f   : > { %1294 = dma.hbm_to_vmem [thread:$0]  (!%p1931_p10), %s274_s6, 1024, %s276_s16, %s265_s23, %s2495_s9, %s2495_s9, %s1725_s14  }
  0x50   : > { %287 = sbr.rel (%p1895_p5) target bundleno = 1173 (0x495), region = 40  ;;  %s1944_s12 = sand.u32 (!%p1895_p5), 1, %s1694_s27  }
  0x51   : > { %s2475_s0 = sshll.u32 (!%p1895_p5), %s1944_s12, 5  ;;  %s290_s11 = scalar_lea.sflag (!%p1895_p5), [#allocation4], %s1944_s12 }
  0x52   : > { %s1950_s18 = scalar_lea.vmem (!%p1895_p5), [#allocation3], %s2475_s0 }
  0x55   : > { %1661 = dma.done.wait (%p1910_p6), %s290_s11, 512  }
  0x56   : > { %1663 = vsyncadd (%p1910_p6), %s290_s11, 4294966784  ;;  %s298_s20 = sand.u32 1, %s1682_s24  }
  0x57   : > { %s1231_s6 = sshll.u32 %s298_s20, 6  ;;  %s299_s15 = scalar_lea.sflag [#allocation7], %s298_s20 }
  0x58   : > { %s302_s16 = scalar_lea.vmem [#allocation6], %s1231_s6 }
  0x59   : > { %1665 = dma.done.wait (%p1921_p3), %s299_s15, 1024  }
  0x5a   : > { %1667 = vsyncadd (%p1921_p3), %s299_s15, 4294966272  ;;  %v1726_v0 = vmov 0   ;;  %v348_v1 = vld [vmem:[%s302_s16 + $0x28] sm:$0xff]  ;;  %v350_v2 = vld [vmem:[%s302_s16 + $0x38] sm:$0xff]  ;;  %vm391_vm0 = vcmask 261120   ;;  %v494_v52 = vlaneseq  ;;  %s1233_s13 = sshll.u32 %s1944_s12, 8 }
  0x5b   : > { %439 = vmatprep.mubr.bf16.mxu0 %v1726_v0  ;;  %574 = vmatprep.mubr.bf16.mxu1 %v1726_v0  ;;  %v347_v3 = vld [vmem:[%s302_s16 + $0x20] sm:$0xff]  ;;  %v367_v4 = vpack.c.bf16 %v350_v2, %v348_v1  ;;  %v349_v5 = vld [vmem:[%s302_s16 + $0x30] sm:$0xff]  ;;  %v344_v6 = vld [vmem:[%s302_s16 + $0x8] sm:$0xff]  ;;  %s2275_s14 = scalar_lea.vmem [#allocation9], %s1233_s13  ;;  %s2496_s9 = sld [smem:[#allocation17_spill]] }
  0x5c   : > { %1401 = vset.pattern.permute.xlu1 %v1726_v0  ;;  %v346_v7 = vld [vmem:[%s302_s16 + $0x18] sm:$0xff]  ;;  %v366_v8 = vpack.c.bf16 %v349_v5, %v347_v3  ;;  %v343_v10 = vld [vmem:[%s302_s16] sm:$0xff]  ;;  %v345_v11 = vld [vmem:[%s302_s16 + $0x10] sm:$0xff]  ;;  %v495_v53 = vshrl.u32 %v494_v52, 7  ;;  %s1263_s11 = sshll.u32 %s1702_s4, 5  ;;  %s1258_s20 = sshll.u32 %s1706_s29, 6 }
  0x5d   : > { %v365_v9 = vpack.c.bf16 %v346_v7, %v344_v6  ;;  %419 = vmatprep.subr.bf16.mxu0 %v367_v4  ;;  %v364_v12 = vpack.c.bf16 %v345_v11, %v343_v10  ;;  %v351_v13 = vld [vmem:[%s1950_s18] sm:$0xff]  ;;  %v352_v14 = vld [vmem:[%s1950_s18 + $0x8] sm:$0xff]  ;;  %v353_v15 = vld [vmem:[%s1950_s18 + $0x10] sm:$0xff]  ;;  %s1073_s6 = sshll.u32 %s2275_s14, 4  ;;  %s1070_s15 = sadd.s32 %s1263_s11, %s1258_s20  ;;  %s2348_s6 = int_to_ptr.vmem [resolvable:$true] %s1073_s6 }
  0x5e   : > { %420 = vmatpush1.bf16.msra.mxu0 %v366_v8  ;;  %v354_v16 = vld [vmem:[%s1950_s18 + $0x18] sm:$0xff]  ;;  %v488_v17 = vpack.c.bf16 %v352_v14, %v351_v13  ;;  %v1403_v18 = vld [vmem:[%s2458_s2] sm:$0xff]   ;;  %v1404_v20 = vld [vmem:[%s2458_s2 + $0x8] sm:$0xff]   ;;  %v496_v54 = vsub.s32 0, %v495_v53  ;;  %s1259_s16 = sshll.u32 %s1070_s15, 7  ;;  %s2497_s21 = sld [smem:[#allocation21_spill]] }
  0x5f   : > { %421 = vmatprep.subr.bf16.mxu0 %v365_v9  ;;  %v489_v19 = vpack.c.bf16 %v354_v16, %v353_v15  ;;  %v1405_v21 = vld [vmem:[%s2458_s2 + $0x10] sm:$0xff]   ;;  %v1406_v22 = vld [vmem:[%s2458_s2 + $0x18] sm:$0xff]   ;;  %v1407_v51 = vld [vmem:[%s2458_s2 + $0x20] ss:$0 sps:$4 sm:$0xff]   ;;  %s1040_s10 = scalar_lea.sflag [#allocation10], %s1944_s12  ;;  %s1564_s13 = scalar_lea.vmem %s2348_s6, 4096 }
  0x60   : > { %502 = vxpose.xlu0.c.b16.start [1/2] (short) %v488_v17, 128  ;;  %p1565_p8 = scmp.ne.s32.totalorder %s2348_s6, %s1564_s13  ;;  %s1727_s0 = smov [#allocation9]  }
  0x61   : > { %p2498_p9 = scmp.ne.s32.totalorder %s2496_s9, 0 }
  0x62   : > { %422 = vmatpush1.bf16.msra.mxu0 %v364_v12 }
  0x63   : > { %p1566_p12 = pnand %p1565_p8, %p2498_p9 }
  0x64   : > { %503 = vxpose.xlu0.c.b16.end [2/2] (short) %v489_v19, 128  ;;  %s2353_s23 = scalar_lea.hbm %s2497_s21, %s1259_s16 }
  0x65   : > { %1239 = vmatmul.mubr.msk.bf16.vlgmr.msra.gmra.mxu0 %vm391_vm0, %v1403_v18  ;;  %p1567_p5 = pneg %p1566_p12 }
  0x66   : > { %449 = vmatprep.mubr.bf16.mxu0 %v1726_v0 }
  0x6d   : > { %1240 = vmatmul.mubr.msk.bf16.gmra.mxu0 %vm391_vm0, %v1404_v20  ;;  %1402 = vset.pattern.permute.xlu0 %v1726_v0 }
  0x6e   : > { %459 = vmatprep.mubr.bf16.mxu0 %v1726_v0 }
  0x75   : > { %1241 = vmatmul.mubr.msk.bf16.gmra.mxu0 %vm391_vm0, %v1405_v21 }
  0x76   : > { %469 = vmatprep.mubr.bf16.mxu0 %v1726_v0 }
  0x7d   : > { %1242 = vmatmul.mubr.msk.bf16.gmra.mxu0 %vm391_vm0, %v1406_v22 }
  0x7e   : > { %479 = vmatprep.mubr.bf16.mxu0 %v1726_v0 }
  0x85   : > { %1243 = vmatmul.mubr.msk.bf16.gmra.mxu0 %vm391_vm0, %v1407_v51 }
  0xc2   : > { %v510_v35 = vpop.trf.xlu0 }
  0xc6   : > { %v511_v36 = vpop.trf.xlu0 }
  0xca   : > { %v512_v37 = vpop.trf.xlu0 }
  0xce   : > { %v513_v38 = vpop.trf.xlu0 }
  0xd2   : > { %v514_v39 = vpop.trf.xlu0 }
  0xd6   : > { %v515_v40 = vpop.trf.xlu0 }
  0xda   : > { %v516_v41 = vpop.trf.xlu0 }
  0xde   : > { %v517_v42 = vpop.trf.xlu0 }
 0x125   : > { %v441_v23 = vpop.f32.mrf.mxu0 }
 0x127   : > { %v443_v24 = vpop.f32.mrf.mxu0 }
 0x129   : > { %v445_v25 = vpop.f32.mrf.mxu0 }
 0x12a   : > { %v490_v34 = vpack.c.bf16 %v445_v25, %v441_v23 }
 0x12b   : > { %v447_v26 = vpop.f32.mrf.mxu0 }
 0x12c   : > { %v491_v33 = vpack.c.bf16 %v447_v26, %v443_v24 }
 0x12d   : > { %v451_v27 = vpop.f32.mrf.mxu0 }
 0x12f   : > { %v453_v28 = vpop.f32.mrf.mxu0 }
 0x131   : > { %v455_v29 = vpop.f32.mrf.mxu0 }
 0x132   : > { %v492_v32 = vpack.c.bf16 %v455_v29, %v451_v27 }
 0x133   : > { %v457_v30 = vpop.f32.mrf.mxu0 }
 0x134   : > { %v493_v31 = vpack.c.bf16 %v457_v30, %v453_v28 }
 0x135   : > { %v461_v43 = vpop.f32.mrf.mxu0 }
 0x136   : > { %554 = vmatprep.subr.bf16.mxu1 %v493_v31  ;;  %v2014_v55 = vrot.slane %v461_v43, %v496_v54 }
 0x137   : > { %555 = vmatpush1.bf16.msra.mxu1 %v492_v32  ;;  %v463_v44 = vpop.f32.mrf.mxu0 }
 0x138   : > { %556 = vmatprep.subr.bf16.mxu1 %v491_v33  ;;  %v2016_v56 = vrot.slane %v463_v44, %v496_v54 }
 0x139   : > { %v2004_v45 = vpop.f32.mrf.mxu0 }
 0x13b   : > { %557 = vmatpush1.bf16.msra.mxu1 %v490_v34  ;;  %v467_v46 = vpop.f32.mrf.mxu0 }
 0x13d   : > { %v2006_v47 = vpop.f32.mrf.mxu0 }
 0x13e   : > { %1244 = vmatmul.mubr.msk.bf16.vlgmr.msra.gmra.mxu1 %vm391_vm0, %v510_v35  ;;  %v927_v48 = vpack.c.bf16 %v2006_v47, %v2004_v45 }
 0x13f   : > { %584 = vmatprep.mubr.bf16.mxu1 %v1726_v0  ;;  %v473_v49 = vpop.f32.mrf.mxu0 }
 0x140   : > { %v928_v50 = vpack.c.bf16 %v473_v49, %v467_v46 }
 0x142   : > { %1004 = vmatprep.mubr.bf16.mxu0 %v928_v50 }
 0x146   : > { %1245 = vmatmul.mubr.msk.bf16.gmra.mxu1 %vm391_vm0, %v511_v36 }
 0x147   : > { %594 = vmatprep.mubr.bf16.mxu1 %v1726_v0 }
 0x14e   : > { %1246 = vmatmul.mubr.msk.bf16.gmra.mxu1 %vm391_vm0, %v512_v37 }
 0x14f   : > { %604 = vmatprep.mubr.bf16.mxu1 %v1726_v0 }
 0x156   : > { %1247 = vmatmul.mubr.msk.bf16.gmra.mxu1 %vm391_vm0, %v513_v38 }
 0x157   : > { %614 = vmatprep.mubr.bf16.mxu1 %v1726_v0 }
 0x15e   : > { %1248 = vmatmul.mubr.msk.bf16.gmra.mxu1 %vm391_vm0, %v514_v39 }
 0x15f   : > { %624 = vmatprep.mubr.bf16.mxu1 %v1726_v0 }
 0x166   : > { %1249 = vmatmul.mubr.msk.bf16.gmra.mxu1 %vm391_vm0, %v515_v40 }
 0x167   : > { %634 = vmatprep.mubr.bf16.mxu1 %v1726_v0 }
 0x16e   : > { %1250 = vmatmul.mubr.msk.bf16.gmra.mxu1 %vm391_vm0, %v516_v41 }
 0x16f   : > { %644 = vmatprep.mubr.bf16.mxu1 %v1726_v0 }
 0x176   : > { %1251 = vmatmul.mubr.msk.bf16.gmra.mxu1 %vm391_vm0, %v517_v42 }
 0x1fe   : > { %v576_v57 = vpop.f32.mrf.mxu1 }
 0x1ff   : > { %v2019_v58 = vadd.f32 %v576_v57, %v2014_v55 }
 0x200   : > { %v578_v59 = vpop.f32.mrf.mxu1 }
 0x201   : > { %v2022_v60 = vadd.f32 %v578_v59, %v2016_v56 }
 0x202   : > { %v580_v61 = vpop.f32.mrf.mxu1 }
 0x203   : > { %v2062_v38 = vadd.f32 %v580_v61, %v2014_v55 }
 0x204   : > { %v582_v62 = vpop.f32.mrf.mxu1 }
 0x205   : > { %v2057_v35 = vadd.f32 %v582_v62, %v2016_v56 }
 0x206   : > { %v586_v63 = vpop.f32.mrf.mxu1 }
 0x207   : > { %v2025_v0 = vadd.f32 %v586_v63, %v2014_v55  ;;  %v658_v43 = vmax.f32 %v2062_v38, %v2057_v35 }
 0x208   : > { %v588_v1 = vpop.f32.mrf.mxu1 }
 0x209   : > { %v2028_v2 = vadd.f32 %v588_v1, %v2016_v56 }
 0x20a   : > { %v590_v3 = vpop.f32.mrf.mxu1 }
 0x20b   : > { %v2054_v33 = vadd.f32 %v590_v3, %v2014_v55 }
 0x20c   : > { %v592_v4 = vpop.f32.mrf.mxu1 }
 0x20d   : > { %v2049_v30 = vadd.f32 %v592_v4, %v2016_v56 }
 0x20e   : > { %v596_v5 = vpop.f32.mrf.mxu1 }
 0x20f   : > { %v2031_v6 = vadd.f32 %v596_v5, %v2014_v55  ;;  %v664_v36 = vmax.f32 %v2054_v33, %v2049_v30 }
 0x210   : > { %v598_v7 = vpop.f32.mrf.mxu1 }
 0x211   : > { %v2034_v8 = vadd.f32 %v598_v7, %v2016_v56 }
 0x212   : > { %v600_v9 = vpop.f32.mrf.mxu1 }
 0x213   : > { %v2037_v10 = vadd.f32 %v600_v9, %v2014_v55 }
 0x214   : > { %v602_v11 = vpop.f32.mrf.mxu1 }
 0x215   : > { %v2040_v12 = vadd.f32 %v602_v11, %v2016_v56 }
 0x216   : > { %v606_v13 = vpop.f32.mrf.mxu1 }
 0x218   : > { %v608_v14 = vpop.f32.mrf.mxu1 }
 0x219   : > { %v2106_v9 = vadd.f32 %v608_v14, %v2016_v56 }
 0x21a   : > { %v610_v15 = vpop.f32.mrf.mxu1 }
 0x21c   : > { %v612_v16 = vpop.f32.mrf.mxu1 }
 0x21e   : > { %v616_v17 = vpop.f32.mrf.mxu1 }
 0x21f   : > { %v2095_v3 = vadd.f32 %v616_v17, %v2014_v55  ;;  %v2111_v17 = vadd.f32 %v606_v13, %v2014_v55  ;;  %v670_v13 = vmax.f32 %v2037_v10, %v2040_v12 }
 0x220   : > { %v618_v18 = vpop.f32.mrf.mxu1 }
 0x221   : > { %v2090_v63 = vadd.f32 %v618_v18, %v2016_v56  ;;  %v2114_v18 = vadd.f32 %v612_v16, %v2016_v56 }
 0x222   : > { %v620_v19 = vpop.f32.mrf.mxu1 }
 0x223   : > { %v679_v5 = vmax.f32 %v2095_v3, %v2090_v63  ;;  %v2103_v7 = vadd.f32 %v620_v19, %v2014_v55  ;;  %v2119_v19 = vadd.f32 %v610_v15, %v2014_v55 }
 0x224   : > { %v622_v20 = vpop.f32.mrf.mxu1 }
 0x225   : > { %v2098_v4 = vadd.f32 %v622_v20, %v2016_v56  ;;  %v673_v20 = vmax.f32 %v2111_v17, %v2106_v9  ;;  %v676_v14 = vmax.f32 %v2119_v19, %v2114_v18 }
 0x226   : > { %v626_v21 = vpop.f32.mrf.mxu1 }
 0x227   : > { %v2079_v57 = vadd.f32 %v626_v21, %v2014_v55  ;;  %v682_v11 = vmax.f32 %v2103_v7, %v2098_v4  ;;  %v667_v21 = vmax.f32 %v2031_v6, %v2034_v8 }
 0x228   : > { %v628_v22 = vpop.f32.mrf.mxu1 }
 0x229   : > { %v2075_v53 = vadd.f32 %v628_v22, %v2016_v56 }
 0x22a   : > { %v630_v23 = vpop.f32.mrf.mxu1 }
 0x22b   : > { %v685_v61 = vmax.f32 %v2079_v57, %v2075_v53  ;;  %v2087_v62 = vadd.f32 %v630_v23, %v2014_v55 }
 0x22c   : > { %v632_v24 = vpop.f32.mrf.mxu1 }
 0x22d   : > { %v2082_v59 = vadd.f32 %v632_v24, %v2016_v56 }
 0x22e   : > { %v636_v25 = vpop.f32.mrf.mxu1 }
 0x22f   : > { %v2043_v27 = vadd.f32 %v636_v25, %v2014_v55  ;;  %v688_v1 = vmax.f32 %v2087_v62, %v2082_v59 }
 0x230   : > { %v638_v26 = vpop.f32.mrf.mxu1 }
 0x231   : > { %v2046_v28 = vadd.f32 %v638_v26, %v2016_v56 }
 0x232   : > { %v640_v29 = vpop.f32.mrf.mxu1 }
 0x233   : > { %v691_v31 = vmax.f32 %v2043_v27, %v2046_v28  ;;  %v641_v52 = vadd.f32 %v640_v29, %v2014_v55 }
 0x234   : > { %v642_v32 = vpop.f32.mrf.mxu1 }
 0x235   : > { %692 = vmax.xlane.f32.xlu0 %v691_v31  ;;  %v2071_v50 = vadd.f32 %v642_v32, %v2016_v56 }
 0x236   : > { %v646_v34 = vpop.f32.mrf.mxu1 }
 0x237   : > { %v647_v39 = vadd.f32 %v646_v34, %v2014_v55  ;;  %v694_v54 = vmax.f32 %v641_v52, %v2071_v50 }
 0x238   : > { %v648_v37 = vpop.f32.mrf.mxu1 }
 0x239   : > { %v649_v40 = vadd.f32 %v648_v37, %v2016_v56  ;;  %665 = vmax.xlane.f32.xlu0 %v664_v36 }
 0x23a   : > { %v650_v41 = vpop.f32.mrf.mxu1 }
 0x23b   : > { %v697_v42 = vmax.f32 %v647_v39, %v649_v40  ;;  %v651_v46 = vadd.f32 %v650_v41, %v2014_v55  ;;  %v655_v55 = vmax.f32 %v2019_v58, %v2022_v60 }
 0x23c   : > { %v652_v44 = vpop.f32.mrf.mxu1 }
 0x23d   : > { %v653_v49 = vadd.f32 %v652_v44, %v2016_v56  ;;  %698 = vmax.xlane.f32.xlu1 %v697_v42  ;;  %659 = vmax.xlane.f32.xlu0 %v658_v43  ;;  %v661_v56 = vmax.f32 %v2025_v0, %v2028_v2 }
 0x23f   : > { %v700_v51 = vmax.f32 %v651_v46, %v653_v49 }
 0x241   : > { %701 = vmax.xlane.f32.xlu1 %v700_v51 }
 0x245   : > { %695 = vmax.xlane.f32.xlu1 %v694_v54 }
 0x249   : > { %686 = vmax.xlane.f32.xlu1 %v685_v61 }
 0x24d   : > { %689 = vmax.xlane.f32.xlu1 %v688_v1 }
 0x251   : > { %680 = vmax.xlane.f32.xlu1 %v679_v5 }
 0x255   : > { %683 = vmax.xlane.f32.xlu1 %v682_v11 }
 0x259   : > { %674 = vmax.xlane.f32.xlu1 %v673_v20 }
 0x25d   : > { %677 = vmax.xlane.f32.xlu1 %v676_v14 }
 0x261   : > { %668 = vmax.xlane.f32.xlu1 %v667_v21 }
 0x265   : > { %671 = vmax.xlane.f32.xlu1 %v670_v13 }
 0x269   : > { %662 = vmax.xlane.f32.xlu1 %v661_v56 }
 0x26d   : > { %656 = vmax.xlane.f32.xlu1 %v655_v55 }
 0x2be   : > { %v693_v15 = vpop.xlane.xlu0 %692 }
 0x2bf   : > { %v727_v16 = vsub.f32 %v2043_v27, %v693_v15  ;;  %v728_v22 = vsub.f32 %v2046_v28, %v693_v15 }
 0x2c1   : > { %v783_v26 = vmul.f32 1.442695, %v727_v16  ;;  %v785_v32 = vmul.f32 1.442695, %v728_v22 }
 0x2c6   : > { %v699_v23 = vpop.xlane.xlu1 %698 }
 0x2c7   : > { %v731_v24 = vsub.f32 %v647_v39, %v699_v23  ;;  %v732_v25 = vsub.f32 %v649_v40, %v699_v23 }
 0x2c9   : > { %v791_v29 = vmul.f32 1.442695, %v731_v24  ;;  %v793_v31 = vmul.f32 1.442695, %v732_v25 }
 0x2ca   : > { %v702_v34 = vpop.xlane.xlu1 %701 }
 0x2cb   : > { %1408 = vpow2.f32 %v791_v29  ;;  %v733_v36 = vsub.f32 %v651_v46, %v702_v34  ;;  %v734_v37 = vsub.f32 %v653_v49, %v702_v34 }
 0x2cc   : > { %1410 = vpow2.f32 %v793_v31 }
 0x2cd   : > { %1412 = vpow2.f32 %v783_v26  ;;  %v795_v41 = vmul.f32 1.442695, %v733_v36  ;;  %v797_v42 = vmul.f32 1.442695, %v734_v37 }
 0x2ce   : > { %1414 = vpow2.f32 %v785_v32  ;;  %v696_v43 = vpop.xlane.xlu1 %695 }
 0x2cf   : > { %1416 = vpow2.f32 %v795_v41  ;;  %v729_v27 = vsub.f32 %v641_v52, %v696_v43  ;;  %v730_v28 = vsub.f32 %v2071_v50, %v696_v43 }
 0x2d0   : > { %1418 = vpow2.f32 %v797_v42 }
 0x2d1   : > { %v787_v39 = vmul.f32 1.442695, %v729_v27  ;;  %v789_v40 = vmul.f32 1.442695, %v730_v28 }
 0x2d2   : > { %v687_v44 = vpop.xlane.xlu1 %686 }
 0x2d3   : > { %1420 = vpow2.f32 %v787_v39  ;;  %v723_v51 = vsub.f32 %v2079_v57, %v687_v44  ;;  %v724_v46 = vsub.f32 %v2075_v53, %v687_v44 }
 0x2d4   : > { %1422 = vpow2.f32 %v789_v40 }
 0x2d5   : > { %v775_v49 = vmul.f32 1.442695, %v723_v51  ;;  %v777_v54 = vmul.f32 1.442695, %v724_v46 }
 0x2d6   : > { %v690_v61 = vpop.xlane.xlu1 %689 }
 0x2d7   : > { %1424 = vpow2.f32 %v775_v49  ;;  %v725_v1 = vsub.f32 %v2087_v62, %v690_v61  ;;  %v726_v52 = vsub.f32 %v2082_v59, %v690_v61 }
 0x2d8   : > { %v2138_v5 = vpop.eup %1408  ;;  %1426 = vpow2.f32 %v777_v54 }
 0x2d9   : > { %v2140_v50 = vpop.eup %1410  ;;  %v779_v11 = vmul.f32 1.442695, %v725_v1  ;;  %v781_v20 = vmul.f32 1.442695, %v726_v52 }
 0x2da   : > { %v2142_v14 = vpop.eup %1412  ;;  %v681_v57 = vpop.xlane.xlu1 %680  ;;  %v841_v53 = vadd.f32 %v2140_v50, %v2138_v5 }
 0x2db   : > { %v2146_v21 = vpop.eup %1414  ;;  %1428 = vpow2.f32 %v779_v11  ;;  %v719_v62 = vsub.f32 %v2095_v3, %v681_v57  ;;  %v720_v59 = vsub.f32 %v2090_v63, %v681_v57 }
 0x2dc   : > { %v2150_v13 = vpop.eup %1416  ;;  %1430 = vpow2.f32 %v781_v20  ;;  %842 = vadd.xlane.f32.xlu1 %v841_v53  ;;  %v835_v23 = vadd.f32 %v2146_v21, %v2142_v14 }
 0x2dd   : > { %v2152_v56 = vpop.eup %1418  ;;  %v767_v55 = vmul.f32 1.442695, %v719_v62  ;;  %v769_v15 = vmul.f32 1.442695, %v720_v59 }
 0x2de   : > { %v684_v16 = vpop.xlane.xlu1 %683  ;;  %v844_v22 = vadd.f32 %v2152_v56, %v2150_v13 }
 0x2df   : > { %1432 = vpow2.f32 %v767_v55  ;;  %v721_v3 = vsub.f32 %v2103_v7, %v684_v16  ;;  %v722_v63 = vsub.f32 %v2098_v4, %v684_v16 }
 0x2e0   : > { %v2160_v24 = vpop.eup %1420  ;;  %1434 = vpow2.f32 %v769_v15  ;;  %845 = vadd.xlane.f32.xlu0 %v844_v22  ;;  %836 = vadd.xlane.f32.xlu1 %v835_v23 }
 0x2e1   : > { %v2162_v25 = vpop.eup %1422  ;;  %v771_v26 = vmul.f32 1.442695, %v721_v3  ;;  %v773_v29 = vmul.f32 1.442695, %v722_v63 }
 0x2e2   : > { %v675_v31 = vpop.xlane.xlu1 %674  ;;  %v838_v32 = vadd.f32 %v2162_v25, %v2160_v24 }
 0x2e3   : > { %1436 = vpow2.f32 %v771_v26  ;;  %v715_v34 = vsub.f32 %v2111_v17, %v675_v31  ;;  %v716_v7 = vsub.f32 %v2106_v9, %v675_v31  ;;  %v666_v9 = vpop.xlane.xlu0 %665 }
 0x2e4   : > { %v2168_v36 = vpop.eup %1424  ;;  %1438 = vpow2.f32 %v773_v29  ;;  %839 = vadd.xlane.f32.xlu0 %v838_v32  ;;  %v709_v61 = vsub.f32 %v2054_v33, %v666_v9  ;;  %v710_v11 = vsub.f32 %v2049_v30, %v666_v9 }
 0x2e5   : > { %v2170_v4 = vpop.eup %1426  ;;  %v759_v37 = vmul.f32 1.442695, %v715_v34  ;;  %v761_v41 = vmul.f32 1.442695, %v716_v7 }
 0x2e6   : > { %v678_v42 = vpop.xlane.xlu1 %677  ;;  %v829_v43 = vadd.f32 %v2170_v4, %v2168_v36  ;;  %v747_v33 = vmul.f32 1.442695, %v709_v61  ;;  %v749_v16 = vmul.f32 1.442695, %v710_v11 }
 0x2e7   : > { %1440 = vpow2.f32 %v759_v37  ;;  %v717_v27 = vsub.f32 %v2119_v19, %v678_v42  ;;  %v718_v28 = vsub.f32 %v2114_v18, %v678_v42  ;;  %v660_v20 = vpop.xlane.xlu0 %659 }
 0x2e8   : > { %v2176_v17 = vpop.eup %1428  ;;  %1442 = vpow2.f32 %v761_v41  ;;  %830 = vadd.xlane.f32.xlu1 %v829_v43  ;;  %v705_v55 = vsub.f32 %v2062_v38, %v660_v20  ;;  %v706_v22 = vsub.f32 %v2057_v35, %v660_v20 }
 0x2e9   : > { %v2178_v39 = vpop.eup %1430  ;;  %v763_v40 = vmul.f32 1.442695, %v717_v27  ;;  %v765_v44 = vmul.f32 1.442695, %v718_v28 }
 0x2ea   : > { %v669_v51 = vpop.xlane.xlu1 %668  ;;  %v832_v46 = vadd.f32 %v2178_v39, %v2176_v17  ;;  %v739_v38 = vmul.f32 1.442695, %v705_v55  ;;  %v741_v35 = vmul.f32 1.442695, %v706_v22 }
 0x2eb   : > { %1444 = vpow2.f32 %v763_v40  ;;  %v711_v49 = vsub.f32 %v2031_v6, %v669_v51  ;;  %v712_v19 = vsub.f32 %v2034_v8, %v669_v51 }
 0x2ec   : > { %v2184_v54 = vpop.eup %1432  ;;  %1446 = vpow2.f32 %v765_v44  ;;  %833 = vadd.xlane.f32.xlu0 %v832_v46 }
 0x2ed   : > { %v2186_v18 = vpop.eup %1434  ;;  %v751_v1 = vmul.f32 1.442695, %v711_v49  ;;  %v753_v52 = vmul.f32 1.442695, %v712_v19 }
 0x2ee   : > { %v672_v57 = vpop.xlane.xlu1 %671  ;;  %v823_v53 = vadd.f32 %v2186_v18, %v2184_v54 }
 0x2ef   : > { %1448 = vpow2.f32 %v751_v1  ;;  %v713_v6 = vsub.f32 %v2037_v10, %v672_v57  ;;  %v714_v8 = vsub.f32 %v2040_v12, %v672_v57 }
 0x2f0   : > { %v2194_v62 = vpop.eup %1436  ;;  %1450 = vpow2.f32 %v753_v52  ;;  %824 = vadd.xlane.f32.xlu1 %v823_v53 }
 0x2f1   : > { %v2196_v59 = vpop.eup %1438  ;;  %v755_v30 = vmul.f32 1.442695, %v713_v6  ;;  %v757_v15 = vmul.f32 1.442695, %v714_v8  ;;  %v2254_v6 = vpop.f32.mrf.mxu0 }
 0x2f2   : > { %v663_v23 = vpop.xlane.xlu1 %662  ;;  %v826_v10 = vadd.f32 %v2196_v59, %v2194_v62 }
 0x2f3   : > { %1452 = vpow2.f32 %v755_v30  ;;  %v707_v12 = vsub.f32 %v2025_v0, %v663_v23  ;;  %v708_v3 = vsub.f32 %v2028_v2, %v663_v23  ;;  %v477_v8 = vpop.f32.mrf.mxu0  ;;  %v948_v23 = vld [vmem:[%s2459_s3] sm:$0xff] }
 0x2f4   : > { %v2204_v63 = vpop.eup %1440  ;;  %1454 = vpow2.f32 %v757_v15  ;;  %827 = vadd.xlane.f32.xlu0 %v826_v10  ;;  %v949_v10 = vld [vmem:[%s2459_s3 + $0x8] sm:$0xff] }
 0x2f5   : > { %v2206_v26 = vpop.eup %1442  ;;  %1456 = vpow2.f32 %v747_v33  ;;  %v743_v29 = vmul.f32 1.442695, %v707_v12  ;;  %v745_v31 = vmul.f32 1.442695, %v708_v3  ;;  %v2256_v33 = vpop.f32.mrf.mxu0  ;;  %v950_v12 = vld [vmem:[%s2459_s3 + $0x10] sm:$0xff]  ;;  %v951_v3 = vld [vmem:[%s2459_s3 + $0x18] sm:$0xff] }
 0x2f6   : > { %1458 = vpow2.f32 %v749_v16  ;;  %v657_v32 = vpop.xlane.xlu1 %656  ;;  %v817_v34 = vadd.f32 %v2206_v26, %v2204_v63  ;;  %v929_v55 = vpack.c.bf16 %v2256_v33, %v2254_v6 }
 0x2f7   : > { %1460 = vpow2.f32 %v743_v29  ;;  %v703_v0 = vsub.f32 %v2019_v58, %v657_v32  ;;  %v704_v2 = vsub.f32 %v2022_v60, %v657_v32  ;;  %v483_v30 = vpop.f32.mrf.mxu0 }
 0x2f8   : > { %v2212_v7 = vpop.eup %1444  ;;  %1462 = vpow2.f32 %v745_v31  ;;  %818 = vadd.xlane.f32.xlu1 %v817_v34  ;;  %v930_v15 = vpack.c.bf16 %v483_v30, %v477_v8 }
 0x2f9   : > { %v2214_v37 = vpop.eup %1446  ;;  %1464 = vpow2.f32 %v739_v38  ;;  %v735_v41 = vmul.f32 1.442695, %v703_v0  ;;  %v737_v42 = vmul.f32 1.442695, %v704_v2  ;;  %v485_v16 = vpop.f32.mrf.mxu0 }
 0x2fa   : > { %1466 = vpow2.f32 %v741_v35  ;;  %v820_v43 = vadd.f32 %v2214_v37, %v2212_v7  ;;  %1012 = vmatprep.mubr.bf16.mxu1 %v930_v15 }
 0x2fb   : > { %1468 = vpow2.f32 %v735_v41  ;;  %v486_v22 = vpop.f32.mrf.mxu0 }
 0x2fc   : > { %v2218_v27 = vpop.eup %1448  ;;  %1470 = vpow2.f32 %v737_v42  ;;  %821 = vadd.xlane.f32.xlu0 %v820_v43 }
 0x2fd   : > { %v2220_v58 = vpop.eup %1450 }
 0x2fe   : > { %v811_v60 = vadd.f32 %v2220_v58, %v2218_v27 }
 0x300   : > { %v2224_v28 = vpop.eup %1452  ;;  %812 = vadd.xlane.f32.xlu1 %v811_v60 }
 0x301   : > { %v2226_v9 = vpop.eup %1454 }
 0x302   : > { %v2228_v40 = vpop.eup %1456  ;;  %v814_v44 = vadd.f32 %v2226_v9, %v2224_v28 }
 0x303   : > { %v2232_v51 = vpop.eup %1458 }
 0x304   : > { %v2234_v46 = vpop.eup %1460  ;;  %815 = vadd.xlane.f32.xlu0 %v814_v44  ;;  %v808_v61 = vadd.f32 %v2232_v51, %v2228_v40 }
 0x305   : > { %v2236_v49 = vpop.eup %1462 }
 0x306   : > { %v2238_v19 = vpop.eup %1464  ;;  %v805_v1 = vadd.f32 %v2236_v49, %v2234_v46 }
 0x307   : > { %v2244_v52 = vpop.eup %1466 }
 0x308   : > { %v2246_v11 = vpop.eup %1468  ;;  %809 = vadd.xlane.f32.xlu0 %v808_v61  ;;  %806 = vadd.xlane.f32.xlu1 %v805_v1  ;;  %v802_v57 = vadd.f32 %v2244_v52, %v2238_v19 }
 0x309   : > { %v2248_v20 = vpop.eup %1470 }
 0x30a   : > { %v799_v53 = vadd.f32 %v2248_v20, %v2246_v11 }
 0x30c   : > { %803 = vadd.xlane.f32.xlu0 %v802_v57  ;;  %800 = vadd.xlane.f32.xlu1 %v799_v53 }
 0x31d   : > { %954 = vperm.xlu1 %1401, %v948_v23  }
 0x321   : > { %964 = vperm.xlu1 %1401, %v950_v12  }
 0x322   : > { %959 = vperm.xlu0 %1402, %v949_v10  }
 0x325   : > { %969 = vperm.xlu1 %1401, %v951_v3  }
 0x365   : > { %v843_v38 = vpop.xlane.xlu1 %842 }
 0x366   : > { %1472 = vrcp.f32 %v843_v38 }
 0x369   : > { %v846_v29 = vpop.xlane.xlu0 %845  ;;  %v837_v31 = vpop.xlane.xlu1 %836 }
 0x36a   : > { %1474 = vrcp.f32 %v846_v29 }
 0x36b   : > { %1476 = vrcp.f32 %v837_v31 }
 0x36d   : > { %v840_v35 = vpop.xlane.xlu0 %839 }
 0x36e   : > { %1478 = vrcp.f32 %v840_v35 }
 0x371   : > { %v831_v32 = vpop.xlane.xlu1 %830 }
 0x372   : > { %1480 = vrcp.f32 %v831_v32 }
 0x373   : > { %v1473_v34 = vpop.eup %1472 }
 0x374   : > { %v892_v0 = vmul.f32 %v1473_v34, %v2140_v50  ;;  %v891_v2 = vmul.f32 %v1473_v34, %v2138_v5 }
 0x375   : > { %v834_v41 = vpop.xlane.xlu0 %833 }
 0x376   : > { %1482 = vrcp.f32 %v834_v41  ;;  %924 = vst [vmem:[%s2275_s14 + $0xe8] sm:$0xff] %v892_v0  ;;  %923 = vst [vmem:[%s2275_s14 + $0xe0] sm:$0xff] %v891_v2 }
 0x377   : > { %v1475_v42 = vpop.eup %1474 }
 0x378   : > { %v1477_v43 = vpop.eup %1476  ;;  %v894_v60 = vmul.f32 %v1475_v42, %v2152_v56  ;;  %v893_v50 = vmul.f32 %v1475_v42, %v2150_v13 }
 0x379   : > { %v825_v44 = vpop.xlane.xlu1 %824  ;;  %v888_v5 = vmul.f32 %v1477_v43, %v2146_v21  ;;  %v887_v61 = vmul.f32 %v1477_v43, %v2142_v14 }
 0x37a   : > { %1484 = vrcp.f32 %v825_v44  ;;  %926 = vst [vmem:[%s2275_s14 + $0xf8] sm:$0xff] %v894_v60  ;;  %v946_v1 = vpack.c.bf16 %v894_v60, %v892_v0  ;;  %925 = vst [vmem:[%s2275_s14 + $0xf0] sm:$0xff] %v893_v50  ;;  %v945_v57 = vpack.c.bf16 %v893_v50, %v891_v2 }
 0x37b   : > { %v1479_v53 = vpop.eup %1478  ;;  %920 = vst [vmem:[%s2275_s14 + $0xc8] sm:$0xff] %v888_v5  ;;  %919 = vst [vmem:[%s2275_s14 + $0xc0] sm:$0xff] %v887_v61 }
 0x37c   : > { %972 = vmatprep.subr.bf16.mxu0 %v946_v1  ;;  %1264 = vmatprep.subr.bf16.mxu1 %v946_v1  ;;  %v890_v56 = vmul.f32 %v1479_v53, %v2162_v25  ;;  %v889_v13 = vmul.f32 %v1479_v53, %v2160_v24 }
 0x37d   : > { %v828_v21 = vpop.xlane.xlu0 %827  ;;  %973 = vmatpush1.bf16.xpose.msra.mxu0 %v945_v57  ;;  %1272 = vmatpush1.bf16.xpose.msra.mxu1 %v945_v57 }
 0x37e   : > { %1486 = vrcp.f32 %v828_v21  ;;  %922 = vst [vmem:[%s2275_s14 + $0xd8] sm:$0xff] %v890_v56  ;;  %v944_v14 = vpack.c.bf16 %v890_v56, %v888_v5  ;;  %921 = vst [vmem:[%s2275_s14 + $0xd0] sm:$0xff] %v889_v13  ;;  %v943_v16 = vpack.c.bf16 %v889_v13, %v887_v61 }
 0x37f   : > { %v1481_v8 = vpop.eup %1480 }
 0x380   : > { %974 = vmatprep.subr.bf16.mxu0 %v944_v14  ;;  %1265 = vmatprep.subr.bf16.mxu1 %v944_v14  ;;  %v884_v30 = vmul.f32 %v1481_v8, %v2170_v4  ;;  %v883_v25 = vmul.f32 %v1481_v8, %v2168_v36 }
 0x381   : > { %v819_v15 = vpop.xlane.xlu1 %818 }
 0x382   : > { %1488 = vrcp.f32 %v819_v15  ;;  %916 = vst [vmem:[%s2275_s14 + $0xa8] sm:$0xff] %v884_v30  ;;  %915 = vst [vmem:[%s2275_s14 + $0xa0] sm:$0xff] %v883_v25 }
 0x383   : > { %v1483_v24 = vpop.eup %1482 }
 0x384   : > { %v886_v22 = vmul.f32 %v1483_v24, %v2178_v39  ;;  %v885_v23 = vmul.f32 %v1483_v24, %v2176_v17 }
 0x385   : > { %v822_v10 = vpop.xlane.xlu0 %821  ;;  %975 = vmatpush1.bf16.xpose.msra.mxu0 %v943_v16  ;;  %1273 = vmatpush1.bf16.xpose.msra.mxu1 %v943_v16 }
 0x386   : > { %1490 = vrcp.f32 %v822_v10  ;;  %918 = vst [vmem:[%s2275_s14 + $0xb8] sm:$0xff] %v886_v22  ;;  %v942_v4 = vpack.c.bf16 %v886_v22, %v884_v30  ;;  %917 = vst [vmem:[%s2275_s14 + $0xb0] sm:$0xff] %v885_v23  ;;  %v941_v38 = vpack.c.bf16 %v885_v23, %v883_v25 }
 0x387   : > { %v1485_v36 = vpop.eup %1484 }
 0x388   : > { %976 = vmatprep.subr.bf16.mxu0 %v942_v4  ;;  %1266 = vmatprep.subr.bf16.mxu1 %v942_v4  ;;  %v880_v12 = vmul.f32 %v1485_v36, %v2186_v18  ;;  %v879_v39 = vmul.f32 %v1485_v36, %v2184_v54 }
 0x389   : > { %v813_v3 = vpop.xlane.xlu1 %812 }
 0x38a   : > { %1492 = vrcp.f32 %v813_v3  ;;  %912 = vst [vmem:[%s2275_s14 + $0x88] sm:$0xff] %v880_v12  ;;  %911 = vst [vmem:[%s2275_s14 + $0x80] sm:$0xff] %v879_v39 }
 0x38b   : > { %v1487_v17 = vpop.eup %1486 }
 0x38c   : > { %v882_v29 = vmul.f32 %v1487_v17, %v2196_v59  ;;  %v881_v31 = vmul.f32 %v1487_v17, %v2194_v62 }
 0x38d   : > { %v816_v35 = vpop.xlane.xlu0 %815  ;;  %977 = vmatpush1.bf16.xpose.msra.mxu0 %v941_v38  ;;  %1274 = vmatpush1.bf16.xpose.msra.mxu1 %v941_v38 }
 0x38e   : > { %1494 = vrcp.f32 %v816_v35  ;;  %914 = vst [vmem:[%s2275_s14 + $0x98] sm:$0xff] %v882_v29  ;;  %v940_v18 = vpack.c.bf16 %v882_v29, %v880_v12  ;;  %913 = vst [vmem:[%s2275_s14 + $0x90] sm:$0xff] %v881_v31  ;;  %v939_v2 = vpack.c.bf16 %v881_v31, %v879_v39 }
 0x38f   : > { %v1489_v54 = vpop.eup %1488 }
 0x390   : > { %978 = vmatprep.subr.bf16.mxu0 %v940_v18  ;;  %1267 = vmatprep.subr.bf16.mxu1 %v940_v18  ;;  %v876_v32 = vmul.f32 %v1489_v54, %v2206_v26  ;;  %v875_v34 = vmul.f32 %v1489_v54, %v2204_v63 }
 0x391   : > { %v810_v59 = vpop.xlane.xlu0 %809  ;;  %v807_v0 = vpop.xlane.xlu1 %806 }
 0x392   : > { %1496 = vrcp.f32 %v810_v59  ;;  %908 = vst [vmem:[%s2275_s14 + $0x68] sm:$0xff] %v876_v32  ;;  %907 = vst [vmem:[%s2275_s14 + $0x60] sm:$0xff] %v875_v34 }
 0x393   : > { %v1491_v62 = vpop.eup %1490  ;;  %1498 = vrcp.f32 %v807_v0 }
 0x394   : > { %v878_v41 = vmul.f32 %v1491_v62, %v2214_v37  ;;  %v877_v42 = vmul.f32 %v1491_v62, %v2212_v7 }
 0x395   : > { %v804_v43 = vpop.xlane.xlu0 %803  ;;  %979 = vmatpush1.bf16.xpose.msra.mxu0 %v939_v2  ;;  %1275 = vmatpush1.bf16.xpose.msra.mxu1 %v939_v2  ;;  %v801_v63 = vpop.xlane.xlu1 %800 }
 0x396   : > { %1500 = vrcp.f32 %v804_v43  ;;  %910 = vst [vmem:[%s2275_s14 + $0x78] sm:$0xff] %v878_v41  ;;  %v938_v26 = vpack.c.bf16 %v878_v41, %v876_v32  ;;  %909 = vst [vmem:[%s2275_s14 + $0x70] sm:$0xff] %v877_v42  ;;  %v937_v44 = vpack.c.bf16 %v877_v42, %v875_v34 }
 0x397   : > { %v1493_v60 = vpop.eup %1492  ;;  %1502 = vrcp.f32 %v801_v63 }
 0x398   : > { %980 = vmatprep.subr.bf16.mxu0 %v938_v26  ;;  %1268 = vmatprep.subr.bf16.mxu1 %v938_v26  ;;  %v872_v37 = vmul.f32 %v1493_v60, %v2220_v58  ;;  %v871_v50 = vmul.f32 %v1493_v60, %v2218_v27 }
 0x39a   : > { %904 = vst [vmem:[%s2275_s14 + $0x48] sm:$0xff] %v872_v37  ;;  %903 = vst [vmem:[%s2275_s14 + $0x40] sm:$0xff] %v871_v50 }
 0x39b   : > { %v1495_v7 = vpop.eup %1494 }
 0x39c   : > { %v874_v5 = vmul.f32 %v1495_v7, %v2226_v9  ;;  %v873_v61 = vmul.f32 %v1495_v7, %v2224_v28 }
 0x39d   : > { %981 = vmatpush1.bf16.xpose.msra.mxu0 %v937_v44  ;;  %1276 = vmatpush1.bf16.xpose.msra.mxu1 %v937_v44 }
 0x39e   : > { %906 = vst [vmem:[%s2275_s14 + $0x58] sm:$0xff] %v874_v5  ;;  %v936_v1 = vpack.c.bf16 %v874_v5, %v872_v37  ;;  %905 = vst [vmem:[%s2275_s14 + $0x50] sm:$0xff] %v873_v61  ;;  %v935_v13 = vpack.c.bf16 %v873_v61, %v871_v50 }
 0x39f   : > { %v1497_v58 = vpop.eup %1496 }
 0x3a0   : > { %v1499_v57 = vpop.eup %1498  ;;  %982 = vmatprep.subr.bf16.mxu0 %v936_v1  ;;  %1269 = vmatprep.subr.bf16.mxu1 %v936_v1  ;;  %v870_v27 = vmul.f32 %v1497_v58, %v2232_v51  ;;  %v869_v53 = vmul.f32 %v1497_v58, %v2228_v40 }
 0x3a1   : > { %v868_v9 = vmul.f32 %v1499_v57, %v2236_v49  ;;  %v867_v56 = vmul.f32 %v1499_v57, %v2234_v46 }
 0x3a2   : > { %902 = vst [vmem:[%s2275_s14 + $0x38] sm:$0xff] %v870_v27  ;;  %901 = vst [vmem:[%s2275_s14 + $0x30] sm:$0xff] %v869_v53 }
 0x3a3   : > { %v1501_v28 = vpop.eup %1500  ;;  %900 = vst [vmem:[%s2275_s14 + $0x28] sm:$0xff] %v868_v9  ;;  %899 = vst [vmem:[%s2275_s14 + $0x20] sm:$0xff] %v867_v56  ;;  %v934_v14 = vpack.c.bf16 %v870_v27, %v868_v9  ;;  %v933_v8 = vpack.c.bf16 %v869_v53, %v867_v56 }
 0x3a4   : > { %v1503_v21 = vpop.eup %1502  ;;  %v866_v51 = vmul.f32 %v1501_v28, %v2244_v52  ;;  %v865_v40 = vmul.f32 %v1501_v28, %v2238_v19 }
 0x3a5   : > { %983 = vmatpush1.bf16.xpose.msra.mxu0 %v935_v13  ;;  %1277 = vmatpush1.bf16.xpose.msra.mxu1 %v935_v13  ;;  %v864_v46 = vmul.f32 %v1503_v21, %v2248_v20  ;;  %v863_v49 = vmul.f32 %v1503_v21, %v2246_v11 }
 0x3a6   : > { %984 = vmatprep.subr.bf16.mxu0 %v934_v14  ;;  %1270 = vmatprep.subr.bf16.mxu1 %v934_v14  ;;  %898 = vst [vmem:[%s2275_s14 + $0x18] sm:$0xff] %v866_v51  ;;  %897 = vst [vmem:[%s2275_s14 + $0x10] sm:$0xff] %v865_v40 }
 0x3a7   : > { %896 = vst [vmem:[%s2275_s14 + $0x8] sm:$0xff] %v864_v46  ;;  %895 = vst [vmem:[%s2275_s14] sm:$0xff] %v863_v49  ;;  %v932_v30 = vpack.c.bf16 %v866_v51, %v864_v46  ;;  %v931_v19 = vpack.c.bf16 %v865_v40, %v863_v49  ;;  %s1568_s14 = sshll.u32 %s1727_s0, 4  ;;  %s1569_s14 = int_to_ptr.vmem [resolvable:$false] %s1568_s14 }
 0x3a8   : > { %s1570_s11 = scalar_lea.vmem %s1569_s14, 8192  ;;  %p1571_p6 = scmp.lt.s32.totalorder %s2348_s6, %s1569_s14 }
 0x3a9   : > { %p1572_p0 = scmp.lt.s32.totalorder %s1570_s11, %s1564_s13 }
 0x3ab   : > { %p1573_p3 = por %p1572_p0, %p1571_p6 }
 0x3ad   : > { %985 = vmatpush1.bf16.xpose.msra.mxu0 %v933_v8  ;;  %1278 = vmatpush1.bf16.xpose.msra.mxu1 %v933_v8  ;;  %p1574_p10 = pnand %p1573_p3, %p1567_p5 }
 0x3ae   : > { %986 = vmatprep.subr.bf16.mxu0 %v932_v30  ;;  %1271 = vmatprep.subr.bf16.mxu1 %v932_v30 }
 0x3b5   : > { %987 = vmatpush1.bf16.xpose.msra.mxu0 %v931_v19  ;;  %1279 = vmatpush1.bf16.xpose.msra.mxu1 %v931_v19 }
 0x3bc   : > { %1005 = vmatmul.mubr.bf16.vlgmr.msra.gmra.mxu0 %v927_v48  ;;  %1013 = vmatmul.mubr.bf16.vlgmr.msra.gmra.mxu1 %v929_v55 }
 0x3bd   : > { %1577 = shalt.err (!%p1574_p10)
}
 0x3be   : > { %s1578_s20 = scalar_lea.hbm %s2353_s23, 4096  ;;  %s1582_s0 = scalar_lea.hbm %s2497_s21, 16384 }
 0x3bf   : > { %p1579_p2 = scmp.ne.s32.totalorder %s2353_s23, %s1578_s20  ;;  %p1583_p7 = scmp.lt.s32.totalorder %s2353_s23, %s2497_s21 }
 0x3c0   : > { %p1584_p13 = scmp.lt.s32.totalorder %s1582_s0, %s1578_s20 }
 0x3c1   : > { %p1580_p1 = pnand %p1579_p2, %p2498_p9 }
 0x3c2   : > { %p1585_p11 = por %p1584_p13, %p1583_p7 }
 0x3c3   : > { %p1581_p4 = pneg %p1580_p1 }
 0x3c5   : > { %p1586_p8 = pnand %p1585_p11, %p1581_p4 }
 0x3c7   : > { %1589 = shalt.err (!%p1586_p8)
}
 0x3c8   : > { %s1728_s13 = smov 256   ;;  %s1729_s14 = smov 16   ;;  %v955_v45 = vpop.permute.xlu1 %954  ;;  %v960_v33 = vpop.permute.xlu0 %959  ;;  %v1504_v10 = vld [vmem:[%s1950_s18] sm:$0xff]  ;;  %v1505_v36 = vld [vmem:[%s1950_s18 + $0x10] sm:$0xff]  ;;  %v1506_v35 = vld [vmem:[%s1950_s18 + $0x8] sm:$0xff] }
 0x3c9   : > { %1285 = dma.vmem_to_hbm [thread:$0]  (%p2498_p9), %s2348_s6, 4096, %s2353_s23, %s1040_s10, %s1728_s13, %s1728_s13, %s1729_s14  }
 0x3ca   : > { %s947_s11 = sld [smem:[#allocation2]]  ;;  %s1254_s20 = sshll.u32 %s1706_s29, 3  ;;  %v1507_v54 = vld [vmem:[%s1950_s18 + $0x18] sm:$0xff] }
 0x3cb   : > { %s1051_s6 = sadd.s32 %s1702_s4, %s1254_s20  ;;  %s2499_s23 = sshll.u32 %s1944_s12, 5 }
 0x3cc   : > { %v965_v47 = vpop.permute.xlu1 %964  ;;  %s333_s10 = scalar_lea.vmem [#allocation8], %s2499_s23  ;;  %s1255_s29 = sshll.u32 %s1051_s6, 7 }
 0x3cd   : > { %s1054_s15 = sshll.u32 %s333_s10, 4  ;;  %s2500_s0 = sld [smem:[#allocation20_spill]]  ;;  %s2386_s15 = int_to_ptr.vmem [resolvable:$true] %s1054_s15 }
 0x3ce   : > { %s1035_s17 = scalar_lea.sflag [#allocation5], %s1944_s12  ;;  %s1590_s14 = scalar_lea.vmem %s2386_s15, 512 }
 0x3cf   : > { %p1591_p12 = scmp.ne.s32.totalorder %s2386_s15, %s1590_s14 }
 0x3d0   : > { %v1021_v52 = vstv %s947_s11  ;;  %v970_v15 = vpop.permute.xlu1 %969  ;;  %s1730_s11 = smov [#allocation8]  }
 0x3d1   : > { %p1592_p5 = pnand %p1591_p12, %p2498_p9  ;;  %s1594_s20 = sshll.u32 %s1730_s11, 4  ;;  %s1595_s20 = int_to_ptr.vmem [resolvable:$false] %s1594_s20 }
 0x3d2   : > { %s1596_s6 = scalar_lea.vmem %s1595_s20, 1024  ;;  %p1597_p0 = scmp.lt.s32.totalorder %s2386_s15, %s1595_s20 }
 0x3d3   : > { %s2393_s5 = scalar_lea.hbm %s2500_s0, %s1255_s29  ;;  %p1593_p6 = pneg %p1592_p5 }
 0x3d4   : > { %p1598_p3 = scmp.lt.s32.totalorder %s1596_s6, %s1590_s14 }
 0x3d6   : > { %p1599_p10 = por %p1598_p3, %p1597_p0 }
 0x3d8   : > { %p1600_p2 = pnand %p1599_p10, %p1593_p6 }
 0x47c   : > { %v1006_v48 = vpop.f32.mrf.mxu0  ;;  %v1014_v11 = vpop.f32.mrf.mxu1 }
 0x47d   : > { %v1007_v20 = vadd.f32 %v1006_v48, %v955_v45  ;;  %v1015_v6 = vadd.f32 %v1014_v11, %v965_v47 }
 0x47e   : > { %v1008_v55 = vpop.f32.mrf.mxu0  ;;  %v1016_v25 = vpop.f32.mrf.mxu1 }
 0x47f   : > { %v1022_v24 = vmul.f32 %v1021_v52, %v1007_v20  ;;  %v1024_v16 = vmul.f32 %v1021_v52, %v1015_v6 }
 0x480   : > { %v1009_v22 = vpop.f32.mrf.mxu0  ;;  %v1017_v23 = vpop.f32.mrf.mxu1 }
 0x481   : > { %v1026_v4 = vadd.f32 %v1504_v10, %v1022_v24  ;;  %v1028_v12 = vadd.f32 %v1505_v36, %v1024_v16  ;;  %v1010_v39 = vadd.f32 %v1009_v22, %v960_v33  ;;  %v1018_v3 = vadd.f32 %v1017_v23, %v970_v15 }
 0x482   : > { %v1011_v17 = vpop.f32.mrf.mxu0  ;;  %v1019_v38 = vpop.f32.mrf.mxu1 }
 0x483   : > { %1030 = vst [vmem:[%s333_s10] sm:$0xff] %v1026_v4  ;;  %1032 = vst [vmem:[%s333_s10 + $0x10] sm:$0xff] %v1028_v12  ;;  %v1023_v29 = vmul.f32 %v1021_v52, %v1010_v39  ;;  %v1025_v31 = vmul.f32 %v1021_v52, %v1018_v3 }
 0x485   : > { %v1027_v18 = vadd.f32 %v1506_v35, %v1023_v29  ;;  %v1029_v32 = vadd.f32 %v1507_v54, %v1025_v31 }
 0x487   : > { %1031 = vst [vmem:[%s333_s10 + $0x8] sm:$0xff] %v1027_v18  ;;  %1033 = vst [vmem:[%s333_s10 + $0x18] sm:$0xff] %v1029_v32 }
 0x488   : > { %1603 = shalt.err (!%p1600_p2)
}
 0x489   : > { %s1604_s18 = scalar_lea.hbm %s2393_s5, 512  ;;  %s1608_s29 = scalar_lea.hbm %s2500_s0, 2048 }
 0x48a   : > { %p1605_p1 = scmp.ne.s32.totalorder %s2393_s5, %s1604_s18  ;;  %p1609_p13 = scmp.lt.s32.totalorder %s2393_s5, %s2500_s0 }
 0x48b   : > { %p1610_p11 = scmp.lt.s32.totalorder %s1608_s29, %s1604_s18 }
 0x48c   : > { %p1606_p4 = pnand %p1605_p1, %p2498_p9 }
 0x48d   : > { %p1611_p8 = por %p1610_p11, %p1609_p13 }
 0x48e   : > { %p1607_p7 = pneg %p1606_p4 }
 0x490   : > { %p1612_p12 = pnand %p1611_p8, %p1607_p7 }
 0x492   : > { %1615 = shalt.err (!%p1612_p12)
}
 0x493   : > { %s1731_s14 = smov 128   ;;  %s1732_s11 = smov 8  }
 0x494   : > { %1284 = dma.vmem_to_hbm [thread:$0]  (%p2498_p9), %s2386_s15, 512, %s2393_s5, %s1035_s17, %s1731_s14, %s1728_s13, %s1732_s11  }
 0x495 PF: > { %s2501_s20 = sld [smem:[#allocation18_spill]]  ;;  %p1303_p5 = scmp.ge.s32.totalorder %s1718_s8, 2 }
 0x496   : > { %s1088_s6 = sand.u32 1, %s1690_s26  }
 0x497   : > { %s1089_s18 = scalar_lea.sflag [#allocation5], %s1088_s6 }
 0x49b   : > { %p2502_p6 = scmp.ne.s32.totalorder %s2501_s20, 0 }
 0x49d   : > { %p1296_p0 = pnand %p1303_p5, %p2502_p6 }
 0x49f   : > { %p1297_p3 = pneg %p1296_p0 }
 0x4a1   : > { %1669 = dma.done.wait (%p1297_p3), %s1089_s18, 512  }
 0x4a2   : > { %1671 = vsyncadd (%p1297_p3), %s1089_s18, 4294966784  ;;  %s1098_s23 = scalar_lea.sflag [#allocation10], %s1088_s6 }
 0x4a3   : > { %1673 = dma.done.wait (%p1297_p3), %s1098_s23, 4096  }
 0x4a4   : > { %1675 = vsyncadd (%p1297_p3), %s1098_s23, 4294963200  ;;  %s30_s8 = sadd.s32 1, %s1718_s8   ;;  %s2503_s12 = sld [smem:[#allocation15_spill]] }
 0x4a5   : > { %p27_p10 = scmp.ge.s32.totalorder %s30_s8, 6   ;;  %s2504_s9 = sld [smem:[#allocation16_spill]] }
 0x4a6   : > { %s2505_s23 = smov %s1682_s24  ;;  %s2506_s24 = smov %s1686_s25 }
 0x4a7   : > { %s2507_s25 = smov %s1905_s19  ;;  %s2508_s26 = smov %s1694_s27 }
 0x4a8   : > { %s2509_s27 = smov %s1698_s28  ;;  %s2510_s28 = smov %s1872_s22 }
 0x4a9   : > { %s2511_s4 = smov %s1710_s30  ;;  %s2512_s29 = smov %s1714_s7 }
 0x4aa   : > { %s2513_s30 = smov %s2503_s12  ;;  %29 = sbr.rel (!%p27_p10) target bundleno = 18 (0x12), region = 115 }
 0x4ab   : > { %s2514_s7 = smov %s2504_s9 }
 0x4af   :  { %1103 = vsyncpa [#allocation4], 1 }
 0x4b0   :  { %1105 = vsyncpa [#allocation4 + $0x1], 1 }
 0x4b1   :  { %1106 = vsyncpa [#allocation7], 1 }
 0x4b2   :  { %1108 = vsyncpa [#allocation7 + $0x1], 1 }
 0x4b3   :  { %1109 = vsyncpa [#allocation5], 1 }
 0x4b4   :  { %1111 = vsyncpa [#allocation5 + $0x1], 1 }
 0x4b5   :  { %1112 = vsyncpa [#allocation10], 1 }
 0x4b6   :  { %1114 = vsyncpa [#allocation10 + $0x1], 1 }

</bundles_post_ra>
